<compile_context>
chip_gen: v6e
topology: v6e:2x2x1
jax: 0.10.0
libtpu: 0.0.40
codegen_flags: <defaults>
</compile_context>

<pallas_src>
import functools

import numpy as np
import jax
import jax.numpy as jnp
from jax.experimental import pallas as pl
from jax.experimental.pallas import tpu as pltpu

_LANE = 128


def _round_up(x, m):
    return ((x + m - 1) // m) * m


def _sublane_multiple(dtype):
    itemsize = jnp.dtype(dtype).itemsize
    return {4: 8, 2: 16, 1: 32}.get(itemsize, 8)


def _make_projection_kernel(n_layers, layer_type, compute_dtype):
    """Fused chain of bias-free Linears (+ LeakyReLU(0.2) when layer_type>1)."""

    def kernel(x_ref, *rest):
        w_refs = rest[:n_layers]
        o_ref = rest[n_layers]
        h = x_ref[...]
        for i in range(n_layers):
            h = jnp.dot(h, w_refs[i][...], preferred_element_type=jnp.float32)
            if i < n_layers - 1:
                if layer_type > 1:
                    # LeakyReLU(0.2) == max(h, 0.2*h) for slope < 1 (VPU mul+max,
                    # cheaper than compare+select).
                    h = jnp.maximum(h, jnp.float32(0.2) * h)
                # Feed the next MXU matmul at the streaming dtype.
                h = h.astype(compute_dtype)
        o_ref[...] = h.astype(o_ref.dtype)

    return kernel


def _pick_row_tile(M, tm_target, sub, desired_steps=8):
    """Row tile: sublane-packed multiple, >= ~8 grid steps when M allows
    (pipeline overlap + megacore balance), and balanced so the last tile is
    not nearly empty."""
    tm_eff = min(tm_target, max(sub, _round_up(M, sub)))
    if M >= desired_steps * sub:
        tm_eff = min(tm_eff, max(sub, _round_up(pl.cdiv(M, desired_steps), sub)))
    n_steps = pl.cdiv(M, tm_eff)
    tm_eff = max(sub, _round_up(pl.cdiv(M, n_steps), sub))   # balanced tiling
    n_steps = pl.cdiv(M, tm_eff)
    return tm_eff, n_steps


def _vmem_limit_bytes(tm_eff, pdims, compute_dtype, out_dtype, n_layers,
                      w_buffers):
    """Explicit scoped-VMEM budget from the actual buffers (+25% headroom)."""
    cd = jnp.dtype(compute_dtype).itemsize
    od = jnp.dtype(out_dtype).itemsize
    x_tiles = 2 * tm_eff * pdims[0] * cd                  # double-buffered in
    o_tiles = 2 * tm_eff * pdims[-1] * od                 # double-buffered out
    w_bytes = sum(pdims[i] * pdims[i + 1] for i in range(n_layers)) * cd * w_buffers
    inter = sum(tm_eff * pdims[i + 1] * 4 for i in range(n_layers))  # f32 acts
    need = x_tiles + o_tiles + w_bytes + inter
    limit = max(int(need * 1.25) + (2 << 20), 32 << 20)
    try:
        cap = int(pltpu.get_tpu_info().vmem_capacity_bytes)
    except Exception:
        cap = 64 << 20  # conservative (v7x per-TC)
    return min(limit, int(cap * 0.9))


@functools.partial(jax.jit,
                   static_argnames=("layer_type", "out_planes", "tm",
                                    "single_buffer_weights"))
def _projection_apply(x, weights_t, *, layer_type, out_planes, tm,
                      single_buffer_weights):
    """x: [..., in_planes]; weights_t: tuple of padded, TRANSPOSED weights
    (shape [pd_in_i, pd_out_i], already cast to the streaming dtype)."""
    n_layers = len(weights_t)
    compute_dtype = weights_t[0].dtype
    out_dtype = x.dtype
    *lead, in_planes = x.shape
    pdims = [int(weights_t[0].shape[0])] + [int(w.shape[1]) for w in weights_t]

    M = 1
    for d in lead:
        M *= int(d)
    sub = _sublane_multiple(compute_dtype)
    tm_eff, n_steps = _pick_row_tile(M, tm, sub)
    Mp = n_steps * tm_eff

    x2 = x.reshape(M, in_planes).astype(compute_dtype)
    if Mp != M or pdims[0] != in_planes:
        # Zero padding is exact: padded weight rows/cols are zero and
        # LeakyReLU(0) = 0.  Skipped entirely when shapes are aligned.
        x2 = jnp.pad(x2, ((0, Mp - M), (0, pdims[0] - in_planes)))

    kernel = _make_projection_kernel(n_layers, layer_type, compute_dtype)

    in_specs = [pl.BlockSpec((tm_eff, pdims[0]), lambda i: (i, 0))]
    for li in range(n_layers):
        shape = (pdims[li], pdims[li + 1])
        idx_map = lambda i: (0, 0)  # constant -> weight DMA'd once, VMEM-resident
        if single_buffer_weights:
            try:
                spec = pl.BlockSpec(shape, idx_map,
                                    pipeline_mode=pl.Buffered(1))
            except TypeError:  # older jax without pipeline_mode kwarg
                spec = pl.BlockSpec(shape, idx_map)
        else:
            spec = pl.BlockSpec(shape, idx_map)
        in_specs.append(spec)

    w_buffers = 1 if single_buffer_weights else 2
    vmem_limit = _vmem_limit_bytes(tm_eff, pdims, compute_dtype, out_dtype,
                                   n_layers, w_buffers)

    itemsize = jnp.dtype(compute_dtype).itemsize
    flops = 2 * Mp * sum(pdims[i] * pdims[i + 1] for i in range(n_layers))
    bytes_accessed = (Mp * pdims[0] * itemsize
                      + sum(pdims[i] * pdims[i + 1] * itemsize
                            for i in range(n_layers))
                      + Mp * pdims[-1] * jnp.dtype(out_dtype).itemsize)

    out_p = pl.pallas_call(
        kernel,
        out_shape=jax.ShapeDtypeStruct((Mp, pdims[-1]), out_dtype),
        grid_spec=pltpu.PrefetchScalarGridSpec(
            num_scalar_prefetch=0,
            grid=(n_steps,),
            in_specs=in_specs,
            out_specs=pl.BlockSpec((tm_eff, pdims[-1]), lambda i: (i, 0)),
        ),
        compiler_params=pltpu.CompilerParams(
            dimension_semantics=("parallel",),
            vmem_limit_bytes=vmem_limit),
        cost_estimate=pl.CostEstimate(
            flops=flops, transcendentals=0, bytes_accessed=bytes_accessed),
    )(x2, *weights_t)

    out = out_p
    if Mp != M or pdims[-1] != out_planes:
        out = out[:M, :out_planes]
    return out.reshape(*lead, out_planes)


class ProjectionPallas:
    """Pallas TPU equivalent of the PyTorch `Projection` module's forward.

    weights: list of PyTorch-layout Linear weights W_i with shape
    [out_i, in_i] (bias=False), applied in order h <- h @ W_i.T.
    """

    def __init__(self, weights, layer_type=0, compute_dtype=None, tm=512):
        assert len(weights) >= 1
        weights = [jnp.asarray(w) for w in weights]
        self.layer_type = int(layer_type)
        self.tm = int(tm)
        self.in_planes = int(weights[0].shape[1])
        self.out_planes = int(weights[-1].shape[0])
        if compute_dtype is None:
            # Default: bf16 streaming + f32 MXU accumulation.  Note results
            # differ slightly from an f32 PyTorch reference (inputs, weights
            # and inter-layer activations are rounded to bf16).
            compute_dtype = (jnp.bfloat16 if weights[0].dtype == jnp.float32
                             else weights[0].dtype)
        self.compute_dtype = compute_dtype

        # One-time (hoisted) weight prep: transpose, zero-pad feature dims to
        # lane multiples, cast to the streaming dtype.
        dims = [self.in_planes] + [int(w.shape[0]) for w in weights]
        pdims = [max(_LANE, _round_up(d, _LANE)) for d in dims]
        wts = []
        for i, w in enumerate(weights):
            assert int(w.shape[1]) == dims[i]
            wt = jnp.pad(
                w.T.astype(compute_dtype),
                ((0, pdims[i] - dims[i]), (0, pdims[i + 1] - dims[i + 1])))
            wts.append(wt)
        self.weights_t = tuple(jax.device_put(w) for w in wts)
        self._single_buffer = True

    def __call__(self, x):
        assert int(x.shape[-1]) == self.in_planes
        if self._single_buffer:
            try:
                return _projection_apply(
                    x, self.weights_t, layer_type=self.layer_type,
                    out_planes=self.out_planes, tm=self.tm,
                    single_buffer_weights=True)
            except Exception:
                # This jax build rejected single-buffered weight specs at
                # lowering time; fall back to default double-buffering.
                self._single_buffer = False
        return _projection_apply(
            x, self.weights_t, layer_type=self.layer_type,
            out_planes=self.out_planes, tm=self.tm,
            single_buffer_weights=False)


def projection_reference(x, weights, *, layer_type=0):
    """Pure-JAX reference matching the PyTorch module (f32)."""
    n = len(weights)
    h = x
    for i, w in enumerate(weights):
        h = h @ jnp.asarray(w).T
        if i < n - 1 and layer_type > 1:
            h = jnp.where(h >= 0, h, 0.2 * h)
    return h


if __name__ == "__main__":
    # TODO(synk): init_weight (xavier_normal_) is host-side parameter setup,
    # not part of the forward pass; deterministic xavier-like weights built here.
    key = jax.random.PRNGKey(0)
    ks = jax.random.split(key, 4)

    def xavier(k, shape):
        fan_out, fan_in = shape
        std = (2.0 / (fan_in + fan_out)) ** 0.5
        return jax.random.normal(k, shape, dtype=jnp.float32) * std

    B, T = 2, 64  # 128 rows total

    # Case 1: default Projection(in_planes) -> single Linear(bias=False),
    # lane-aligned dims (no pad / slice in the wrapper).
    d0 = 128
    x1 = jax.random.normal(ks[0], (B, T, d0), dtype=jnp.float32)
    w_single = xavier(ks[1], (d0, d0))
    y1_ref = projection_reference(x1, [w_single])

    proj1_f32 = ProjectionPallas([w_single], compute_dtype=jnp.float32)
    y1 = jax.block_until_ready(proj1_f32(x1))
    assert y1.shape == (B, T, d0), y1.shape
    np.testing.assert_allclose(np.asarray(y1), np.asarray(y1_ref),
                               rtol=1e-4, atol=1e-4)

    proj1_bf16 = ProjectionPallas([w_single])  # default bf16 streaming
    y1b = jax.block_until_ready(proj1_bf16(x1))
    np.testing.assert_allclose(np.asarray(y1b), np.asarray(y1_ref),
                               rtol=3e-2, atol=3e-2)

    # Case 2: Projection(in, out, n_layers=2, layer_type=2):
    #   Linear -> LeakyReLU(0.2) -> Linear (all bias=False), unaligned dims.
    in_planes, out_planes = 96, 64
    x2 = jax.random.normal(ks[0], (B, T, in_planes), dtype=jnp.float32)
    w_a = xavier(ks[2], (out_planes, in_planes))
    w_b = xavier(ks[3], (out_planes, out_planes))
    y2_ref = projection_reference(x2, [w_a, w_b], layer_type=2)

    proj2_f32 = ProjectionPallas([w_a, w_b], layer_type=2,
                                 compute_dtype=jnp.float32)
    y2 = jax.block_until_ready(proj2_f32(x2))
    assert y2.shape == (B, T, out_planes), y2.shape
    np.testing.assert_allclose(np.asarray(y2), np.asarray(y2_ref),
                               rtol=1e-4, atol=1e-4)

    proj2_bf16 = ProjectionPallas([w_a, w_b], layer_type=2)  # default bf16
    y2b = jax.block_until_ready(proj2_bf16(x2))
    np.testing.assert_allclose(np.asarray(y2b), np.asarray(y2_ref),
                               rtol=3e-2, atol=3e-2)

    print("KERNEL_OK")
</pallas_src>

<mosaic_0001>
module attributes {stable_mosaic.version = 11 : i64} {
  func.func @kernel(%arg0: i32, %arg1: memref<16x128xf32, #tpu.memory_space<vmem>>, %arg2: memref<128x128xf32, #tpu.memory_space<vmem>>, %arg3: memref<16x128xf32, #tpu.memory_space<vmem>>) attributes {dimension_semantics = [#tpu.dimension_semantics<parallel>], iteration_bounds = array<i64: 8>, scalar_prefetch = 0 : i64, scratch_operands = 0 : i64, tpu.core_type = #tpu.core_type<tc>, window_params = [{transform_indices = @transform_0, window_bounds = array<i64: 16, 128>}, {pipeline_mode = #tpu.pipeline_mode<synchronous>, transform_indices = @transform_1, window_bounds = array<i64: 128, 128>}, {transform_indices = @transform_2, window_bounds = array<i64: 16, 128>}]} {
    %c0 = arith.constant 0 : index
    %c0_0 = arith.constant 0 : index
    %0 = vector.load %arg1[%c0, %c0_0] : memref<16x128xf32, #tpu.memory_space<vmem>>, vector<16x128xf32>
    %c0_1 = arith.constant 0 : index
    %c0_2 = arith.constant 0 : index
    %1 = vector.load %arg2[%c0_1, %c0_2] : memref<128x128xf32, #tpu.memory_space<vmem>>, vector<128x128xf32>
    %cst = arith.constant dense<0.000000e+00> : vector<16x128xf32>
    %2 = tpu.matmul %0, %1, %cst {dimension_numbers = #tpu.dot_dimension_numbers<[1], [0], [0], [1], [0, 0, 1, 1], [], []>} : vector<16x128xf32>, vector<128x128xf32>, vector<16x128xf32> -> vector<16x128xf32>
    %c0_3 = arith.constant 0 : index
    %c0_4 = arith.constant 0 : index
    %3 = vector.load %arg3[%c0_3, %c0_4] : memref<16x128xf32, #tpu.memory_space<vmem>>, vector<16x128xf32>
    tpu.vector_store %arg3[%c0_3, %c0_4], %2 {strides = array<i32>} : memref<16x128xf32, #tpu.memory_space<vmem>>, vector<16x128xf32>,
    return
  }
  func.func @transform_0(%arg0: i32) -> (i32, i32) {
    %c0_i32 = arith.constant 0 : i32
    %c0_i32_0 = arith.constant 0 : i32
    return %arg0, %c0_i32 : i32, i32
  }
  func.func @transform_1(%arg0: i32) -> (i32, i32) {
    %c0_i32 = arith.constant 0 : i32
    %c0_i32_0 = arith.constant 0 : i32
    %c0_i32_1 = arith.constant 0 : i32
    return %c0_i32, %c0_i32_0 : i32, i32
  }
  func.func @transform_2(%arg0: i32) -> (i32, i32) {
    %c0_i32 = arith.constant 0 : i32
    %c0_i32_0 = arith.constant 0 : i32
    return %arg0, %c0_i32 : i32, i32
  }
}

module attributes {stable_mosaic.version = 11 : i64} {
  func.func @kernel(%arg0: i32, %arg1: memref<16x128xf32, #tpu.memory_space<vmem>>, %arg2: memref<128x128xf32, #tpu.memory_space<vmem>>, %arg3: memref<16x128xf32, #tpu.memory_space<vmem>>) attributes {dimension_semantics = [#tpu.dimension_semantics<parallel>], iteration_bounds = array<i64: 8>, scalar_prefetch = 0 : i64, scratch_operands = 0 : i64, tpu.core_type = #tpu.core_type<tc>, window_params = [{transform_indices = @transform_0, window_bounds = array<i64: 16, 128>}, {pipeline_mode = #tpu.pipeline_mode<synchronous>, transform_indices = @transform_1, window_bounds = array<i64: 128, 128>}, {transform_indices = @transform_2, window_bounds = array<i64: 16, 128>}]} {
    %c0 = arith.constant 0 : index
    %c0_0 = arith.constant 0 : index
    %0 = vector.load %arg1[%c0, %c0_0] : memref<16x128xf32, #tpu.memory_space<vmem>>, vector<16x128xf32>
    %c0_1 = arith.constant 0 : index
    %c0_2 = arith.constant 0 : index
    %1 = vector.load %arg2[%c0_1, %c0_2] : memref<128x128xf32, #tpu.memory_space<vmem>>, vector<128x128xf32>
    %cst = arith.constant dense<0.000000e+00> : vector<16x128xf32>
    %2 = tpu.matmul %0, %1, %cst {dimension_numbers = #tpu.dot_dimension_numbers<[1], [0], [0], [1], [0, 0, 1, 1], [], []>} : vector<16x128xf32>, vector<128x128xf32>, vector<16x128xf32> -> vector<16x128xf32>
    %c0_3 = arith.constant 0 : index
    %c0_4 = arith.constant 0 : index
    %3 = vector.load %arg3[%c0_3, %c0_4] : memref<16x128xf32, #tpu.memory_space<vmem>>, vector<16x128xf32>
    tpu.vector_store %arg3[%c0_3, %c0_4], %2 {strides = array<i32>} : memref<16x128xf32, #tpu.memory_space<vmem>>, vector<16x128xf32>,
    return
  }
  func.func @transform_0(%arg0: i32) -> (i32, i32) {
    %c0_i32 = arith.constant 0 : i32
    %c0_i32_0 = arith.constant 0 : i32
    return %arg0, %c0_i32 : i32, i32
  }
  func.func @transform_1(%arg0: i32) -> (i32, i32) {
    %c0_i32 = arith.constant 0 : i32
    %c0_i32_0 = arith.constant 0 : i32
    %c0_i32_1 = arith.constant 0 : i32
    return %c0_i32, %c0_i32_0 : i32, i32
  }
  func.func @transform_2(%arg0: i32) -> (i32, i32) {
    %c0_i32 = arith.constant 0 : i32
    %c0_i32_0 = arith.constant 0 : i32
    return %arg0, %c0_i32 : i32, i32
  }
}

</mosaic_0001>

<bundles_post_ra>
// kernel: _projection_apply.1
= control target key start
LH: loop header
LB: loop body
LE: loop exit
PB: predicated region body
PF: predicated region fallthrough
CT: control target
= control target key end

     0   :  { %7 = vsyncpa [#allocation3], 0  ;;  %s838_s0 = inlined_call_operand.hbm [shape: f32[128,128], index: 0, kind: input, shape index: {}]   ;;  %s839_s1 = inlined_call_operand.hbm [shape: f32[128,128], index: 1, kind: input, shape index: {}]   ;;  %s840_s2 = inlined_call_operand.hbm [shape: f32[128,128], index: 2, kind: output, shape index: {}]  }
   0x1   :  { %9 = vsyncpa [#allocation3 + $0x1], 0 }
   0x2   :  { %10 = vsyncpa [#allocation6], 0 }
   0x3   :  { %11 = vsyncpa [#allocation4], 0 }
   0x4   :  { %13 = vsyncpa [#allocation4 + $0x1], 0  ;;  %s649_s9 = smov 0   ;;  %s651_s10 = smov 0  }
   0x5   :  { %s653_s11 = smov 0   ;;  %s655_s12 = smov 0  }
   0x6 LB: > { %s670_s13 = sadd.s32 4294967295, %s625_s12   ;;  %s371_s14 = sadd.s32 4294967294, %s625_s12   ;;  %s625_s12 = sphi %s655_s12, %s861_s12   ;;  %s621_s11 = sphi %s653_s11, %s860_s11   ;;  %s617_s10 = sphi %s651_s10, %s859_s10   ;;  %s613_s9 = sphi %s649_s9, %s858_s9  }
   0x7   : > { %p39_p0 = scmp.ne.s32.totalorder %s617_s10, %s613_s9  ;;  %p841_p1 = scmp.eq.s32.totalorder %s670_s13, 0 }
   0x8   : > { %p90_p3 = scmp.eq.s32.totalorder %s371_s14, 7  ;;  %p372_p5 = scmp.ge.s32.totalorder %s625_s12, 1 }
   0x9   : > { %p679_p4 = por %p841_p1, %p39_p0  ;;  %p97_p7 = scmp.lt.s32.totalorder %s625_s12, 9 }
   0xa   : > { %p684_p6 = por %p90_p3, %p39_p0  ;;  %s627_s18 = smov [#allocation5]  }
   0xb   : > { %s845_s15 = scalar_select %p679_p4, 1, 0 }
   0xc   : > { %s846_s16 = scalar_select %p684_p6, 1, 0 }
   0xd   : > { %p689_p8 = pnand %p372_p5, %p97_p7  ;;  %s109_s19 = sshll.u32 %s627_s18, 4  ;;  %s110_s19 = int_to_ptr.vmem [resolvable:$true] %s109_s19 }
   0xe   : > { %s702_s21 = sadd.s32 1, %s625_s12   ;;  %s26_s22 = sadd.s32 1, %s621_s11 }
   0xf   : > { %s847_s17 = scalar_select %p689_p8, 1, 0 }
  0x10   : > { %p450_p9 = pneg %p689_p8  ;;  %s23_s23 = ssub.s32 %s625_s12, %s702_s21 }
  0x11   : > { %s514_s24 = scalar_lea.vmem %s110_s19, 2048  ;;  %p522_p3 = scmp.lt.s32.totalorder %s110_s19, %s110_s19 }
  0x12   : > { %p697_p10 = pnand %p450_p9, %p841_p1  ;;  %p515_p12 = scmp.ne.s32.totalorder %s110_s19, %s514_s24 }
  0x13   : > { %p523_p5 = scmp.lt.s32.totalorder %s514_s24, %s514_s24 }
  0x14   : > { %p505_p11 = pneg %p697_p10 }
  0x15   : > { %p524_p7 = por %p523_p5, %p522_p3 }
  0x16   : > { %p517_p13 = pnand %p515_p12, %p505_p11 }
  0x18   : > { %p518_p0 = pneg %p517_p13 }
  0x1a   : > { %p525_p2 = pnand %p524_p7, %p518_p0 }
  0x1c   : > { %528 = shalt.err (!%p525_p2)
}
  0x1d   : > { %s628_s25 = smov 128   ;;  %s629_s26 = smov 8  }
  0x1e   : > { %453 = dma.hbm_to_vmem [thread:$0]  (!%p697_p10), %s839_s1, 2048, %s110_s19, [#allocation6], %s628_s25, %s628_s25, %s629_s26  }
  0x1f   : > { %p24_p2 = scmp.eq.s32.totalorder %s23_s23, 0  ;;  %p33_p9 = scmp.ne.s32.totalorder %s621_s11, %s617_s10 }
  0x20   : > { %p34_p11 = scmp.eq.s32.totalorder %s625_s12, 0  ;;  %p463_p12 = scmp.lt.s32.totalorder %s625_s12, 8 }
  0x21   : > { %s722_s29 = scalar_select %p24_p2, %s621_s11, %s26_s22  }
  0x22   : > { %p35_p13 = por %p34_p11, %p33_p9  ;;  %p849_p0 = scmp.eq.s32.totalorder %s670_s13, 7 }
  0x23   : > { %s123_s3 = sand.u32 1, %s621_s11   ;;  %s387_s4 = sshll.u32 %s625_s12, 8 }
  0x24   : > { %p726_p3 = por %p849_p0, %p33_p9  ;;  %s375_s5 = sshll.u32 %s123_s3, 4 }
  0x25   : > { %s735_s8 = scalar_lea.hbm %s838_s0, %s387_s4  ;;  %s127_s14 = scalar_lea.vmem [#allocation2], %s375_s5 }
  0x26   : > { %s850_s30 = scalar_select %p726_p3, 1, 0 }
  0x27   : > { %s134_s18 = sshll.u32 %s127_s14, 4  ;;  %p737_p10 = pnand %p463_p12, %p35_p13  ;;  %s741_s18 = int_to_ptr.vmem [resolvable:$true] %s134_s18 }
  0x28   : > { %s743_s20 = scalar_lea.sflag [#allocation3], %s123_s3  ;;  %s529_s22 = scalar_lea.hbm %s735_s8, 256 }
  0x29   : > { %p530_p5 = scmp.ne.s32.totalorder %s735_s8, %s529_s22  ;;  %p531_p7 = pneg %p737_p10 }
  0x2a   : > { %s534_s27 = scalar_lea.hbm %s838_s0, 2048  ;;  %p535_p11 = scmp.lt.s32.totalorder %s735_s8, %s838_s0 }
  0x2b   : > { %p532_p2 = pnand %p531_p7, %p530_p5  ;;  %p536_p12 = scmp.lt.s32.totalorder %s534_s27, %s529_s22 }
  0x2d   : > { %p533_p9 = pneg %p532_p2  ;;  %p537_p13 = por %p536_p12, %p535_p11 }
  0x2f   : > { %p538_p0 = pnand %p537_p13, %p533_p9 }
  0x31   : > { %541 = shalt.err (!%p538_p0)
}
  0x32   : > { %s542_s3 = scalar_lea.vmem %s741_s18, 256  ;;  %s630_s5 = smov [#allocation2]  }
  0x33   : > { %p543_p1 = scmp.ne.s32.totalorder %s741_s18, %s542_s3  ;;  %s547_s6 = sshll.u32 %s630_s5, 4  ;;  %s548_s6 = int_to_ptr.vmem [resolvable:$false] %s547_s6 }
  0x34   : > { %s549_s7 = scalar_lea.vmem %s548_s6, 512  ;;  %p550_p2 = scmp.lt.s32.totalorder %s741_s18, %s548_s6 }
  0x35   : > { %p545_p6 = pnand %p543_p1, %p531_p7  ;;  %p551_p3 = scmp.lt.s32.totalorder %s549_s7, %s542_s3 }
  0x37   : > { %p546_p5 = pneg %p545_p6  ;;  %p552_p4 = por %p551_p3, %p550_p2 }
  0x39   : > { %p553_p8 = pnand %p552_p4, %p546_p5 }
  0x3b   : > { %556 = shalt.err (!%p553_p8)
}
  0x3c   : > { %457 = dma.hbm_to_vmem [thread:$0]  (!%p737_p10), %s735_s8, 256, %s741_s18, %s743_s20, %s628_s25, %s628_s25, %s629_s26  }
  0x3d   : > { %p852_p1 = scmp.ne.s32.totalorder %s847_s17, 0 }
  0x3e   : > { %s770_s14 = sand.u32 (!%p852_p1), 1, %s617_s10   ;;  %p853_p4 = scmp.ne.s32.totalorder (!%p852_p1), %s845_s15, 0 }
  0x3f   : > { %146 = sbr.rel (%p852_p1) target bundleno = 314 (0x13a), region = 28  ;;  %s379_s22 = sshll.u32 (!%p852_p1), %s770_s14, 4 }
  0x40   : > { %s149_s23 = scalar_lea.sflag (!%p852_p1), [#allocation3], %s770_s14  ;;  %s776_s19 = scalar_lea.vmem (!%p852_p1), [#allocation2], %s379_s22 }
  0x44   : > { %600 = dma.done.wait (%p853_p4), %s149_s23, 256  }
  0x45   : > { %602 = vsyncadd (%p853_p4), %s149_s23, 4294967040  ;;  %p854_p6 = scmp.eq.s32.totalorder %s670_s13, 0 }
  0x47   : > { %604 = dma.done.wait (%p854_p6), [#allocation6], 2048   ;;  %p855_p8 = pmov %p854_p6 }
  0x48   : > { %v196_v0 = vld [vmem:[#allocation5 + $0x78] sm:$0xff]  ;;  %v195_v1 = vld [vmem:[#allocation5 + $0x70] sm:$0xff]  ;;  %v194_v2 = vld [vmem:[#allocation5 + $0x68] sm:$0xff]  ;;  %s176_s15 = scalar_lea.vmem [#allocation7], %s379_s22  ;;  %s388_s25 = sshll.u32 %s670_s13, 8 }
  0x49   : > { %606 = vsyncadd (%p855_p8), [#allocation6], 4294965248  ;;  %407 = vmatprep.subr.mxu0 %v196_v0  ;;  %v193_v3 = vld [vmem:[#allocation5 + $0x60] sm:$0xff]  ;;  %v192_v5 = vld [vmem:[#allocation5 + $0x58] sm:$0xff]  ;;  %s288_s17 = sshll.u32 %s176_s15, 4  ;;  %s796_s18 = scalar_lea.hbm %s840_s2, %s388_s25  ;;  %s791_s17 = int_to_ptr.vmem [resolvable:$true] %s288_s17 }
  0x4a   : > { %408 = vmatpush3.msra.mxu0 %v196_v0  ;;  %v179_v4 = vld [vmem:[%s776_s19] sm:$0xff]  ;;  %v190_v7 = vld [vmem:[#allocation5 + $0x48] sm:$0xff]  ;;  %v188_v9 = vld [vmem:[#allocation5 + $0x38] sm:$0xff]  ;;  %s275_s20 = scalar_lea.sflag [#allocation4], %s770_s14  ;;  %s557_s24 = scalar_lea.vmem %s791_s17, 256 }
  0x4b   : > { %409 = vmatprep.subr.mxu0 %v195_v1  ;;  %439 = vmatprep.mubr.f32.mxu0 %v179_v4  ;;  %v191_v6 = vld [vmem:[#allocation5 + $0x50] sm:$0xff]  ;;  %v189_v8 = vld [vmem:[#allocation5 + $0x40] sm:$0xff]  ;;  %v186_v11 = vld [vmem:[#allocation5 + $0x28] sm:$0xff]  ;;  %p558_p3 = scmp.ne.s32.totalorder %s791_s17, %s557_s24  ;;  %p856_p10 = scmp.ne.s32.totalorder %s850_s30, 0 }
  0x4c   : > { %410 = vmatpush3.msra.mxu0 %v195_v1  ;;  %v187_v10 = vld [vmem:[#allocation5 + $0x30] sm:$0xff]  ;;  %v185_v12 = vld [vmem:[#allocation5 + $0x20] sm:$0xff]  ;;  %v184_v13 = vld [vmem:[#allocation5 + $0x18] sm:$0xff]  ;;  %s631_s13 = smov [#allocation7]  }
  0x4d   : > { %411 = vmatprep.subr.mxu0 %v194_v2  ;;  %v183_v14 = vld [vmem:[#allocation5 + $0x10] sm:$0xff]  ;;  %v182_v15 = vld [vmem:[#allocation5 + $0x8] sm:$0xff]  ;;  %v181_v16 = vld [vmem:[#allocation5] sm:$0xff]  ;;  %p559_p7 = pnand %p558_p3, %p856_p10  ;;  %s561_s27 = sshll.u32 %s631_s13, 4  ;;  %s562_s27 = int_to_ptr.vmem [resolvable:$false] %s561_s27 }
  0x4e   : > { %412 = vmatpush3.msra.mxu0 %v194_v2  ;;  %v180_v17 = vld [vmem:[%s776_s19 + $0x8] sm:$0xff]  ;;  %s563_s28 = scalar_lea.vmem %s562_s27, 512  ;;  %p564_p11 = scmp.lt.s32.totalorder %s791_s17, %s562_s27 }
  0x4f   : > { %413 = vmatprep.subr.mxu0 %v193_v3  ;;  %p560_p9 = pneg %p559_p7  ;;  %p565_p12 = scmp.lt.s32.totalorder %s563_s28, %s557_s24 }
  0x50   : > { %414 = vmatpush3.msra.mxu0 %v193_v3 }
  0x51   : > { %415 = vmatprep.subr.mxu0 %v192_v5  ;;  %p566_p13 = por %p565_p12, %p564_p11 }
  0x52   : > { %416 = vmatpush3.msra.mxu0 %v192_v5 }
  0x53   : > { %417 = vmatprep.subr.mxu0 %v191_v6  ;;  %p567_p0 = pnand %p566_p13, %p560_p9 }
  0x54   : > { %418 = vmatpush3.msra.mxu0 %v191_v6 }
  0x55   : > { %419 = vmatprep.subr.mxu0 %v190_v7 }
  0x56   : > { %420 = vmatpush3.msra.mxu0 %v190_v7 }
  0x57   : > { %421 = vmatprep.subr.mxu0 %v189_v8 }
  0x58   : > { %422 = vmatpush3.msra.mxu0 %v189_v8 }
  0x59   : > { %423 = vmatprep.subr.mxu0 %v188_v9 }
  0x5a   : > { %424 = vmatpush3.msra.mxu0 %v188_v9 }
  0x5b   : > { %425 = vmatprep.subr.mxu0 %v187_v10 }
  0x5c   : > { %426 = vmatpush3.msra.mxu0 %v187_v10 }
  0x5d   : > { %427 = vmatprep.subr.mxu0 %v186_v11 }
  0x5e   : > { %428 = vmatpush3.msra.mxu0 %v186_v11 }
  0x5f   : > { %429 = vmatprep.subr.mxu0 %v185_v12 }
  0x60   : > { %430 = vmatpush3.msra.mxu0 %v185_v12 }
  0x61   : > { %431 = vmatprep.subr.mxu0 %v184_v13 }
  0x62   : > { %432 = vmatpush3.msra.mxu0 %v184_v13 }
  0x63   : > { %433 = vmatprep.subr.mxu0 %v183_v14 }
  0x64   : > { %434 = vmatpush3.msra.mxu0 %v183_v14 }
  0x65   : > { %435 = vmatprep.subr.mxu0 %v182_v15 }
  0x66   : > { %436 = vmatpush3.msra.mxu0 %v182_v15 }
  0x67   : > { %437 = vmatprep.subr.mxu0 %v181_v16 }
  0x68   : > { %438 = vmatpush3.msra.mxu0 %v181_v16 }
  0x69   : > { %440 = vmatmul.mubr.f32.vlgmr.msra.gmra.mxu0 %v180_v17 }
 0x129   : > { %v441_v18 = vpop.f32.mrf.mxu0 }
 0x12a   : > { %273 = vst [vmem:[%s176_s15 + $0x8] sm:$0xff] %v441_v18 }
 0x12b   : > { %v263_v19 = vpop.f32.mrf.mxu0 }
 0x12c   : > { %272 = vst [vmem:[%s176_s15] sm:$0xff] %v263_v19 }
 0x12d   : > { %570 = shalt.err (!%p567_p0)
}
 0x12e   : > { %s571_s4 = scalar_lea.hbm %s796_s18, 256  ;;  %s575_s6 = scalar_lea.hbm %s840_s2, 2048 }
 0x12f   : > { %p572_p5 = scmp.ne.s32.totalorder %s796_s18, %s571_s4  ;;  %p576_p4 = scmp.lt.s32.totalorder %s796_s18, %s840_s2 }
 0x130   : > { %p577_p6 = scmp.lt.s32.totalorder %s575_s6, %s571_s4 }
 0x131   : > { %p573_p2 = pnand %p572_p5, %p856_p10 }
 0x132   : > { %p578_p8 = por %p577_p6, %p576_p4 }
 0x133   : > { %p574_p1 = pneg %p573_p2 }
 0x135   : > { %p579_p3 = pnand %p578_p8, %p574_p1 }
 0x137   : > { %582 = shalt.err (!%p579_p3)
}
 0x138   : > { %s632_s23 = smov 128   ;;  %s633_s19 = smov 8  }
 0x139   : > { %448 = dma.vmem_to_hbm [thread:$0]  (%p856_p10), %s791_s17, 256, %s796_s18, %s275_s20, %s632_s23, %s632_s23, %s633_s19  }
 0x13a PF: > { %p465_p7 = scmp.ge.s32.totalorder %s625_s12, 2  ;;  %s303_s15 = sand.u32 1, %s613_s9  }
 0x13b   : > { %p857_p9 = scmp.ne.s32.totalorder %s846_s16, 0  ;;  %s304_s25 = scalar_lea.sflag [#allocation4], %s303_s15 }
 0x13d   : > { %p459_p11 = pnand %p465_p7, %p857_p9 }
 0x13f   : > { %p460_p12 = pneg %p459_p11 }
 0x141   : > { %608 = dma.done.wait (%p460_p12), %s304_s25, 256  }
 0x142   : > { %610 = vsyncadd (%p460_p12), %s304_s25, 4294967040  ;;  %p16_p13 = scmp.ge.s32.totalorder %s702_s21, 10   ;;  %s858_s9 = smov %s617_s10 }
 0x143   : > { %s859_s10 = smov %s621_s11  ;;  %s860_s11 = smov %s722_s29 }
 0x144   : > { %s861_s12 = smov %s702_s21  ;;  %18 = sbr.rel (!%p16_p13) target bundleno = 6 (0x6), region = 77 }
 0x149   :  { %309 = vsyncpa [#allocation3], 1 }
 0x14a   :  { %311 = vsyncpa [#allocation3 + $0x1], 1 }
 0x14b   :  { %312 = vsyncpa [#allocation6], 1 }
 0x14c   :  { %313 = vsyncpa [#allocation4], 1 }
 0x14d   :  { %315 = vsyncpa [#allocation4 + $0x1], 1 }

// kernel: _projection_apply.1
= control target key start
LH: loop header
LB: loop body
LE: loop exit
PB: predicated region body
PF: predicated region fallthrough
CT: control target
= control target key end

     0   :  { %7 = vsyncpa [#allocation3], 0  ;;  %s838_s0 = inlined_call_operand.hbm [shape: f32[128,128], index: 0, kind: input, shape index: {}]   ;;  %s839_s1 = inlined_call_operand.hbm [shape: f32[128,128], index: 1, kind: input, shape index: {}]   ;;  %s840_s2 = inlined_call_operand.hbm [shape: f32[128,128], index: 2, kind: output, shape index: {}]  }
   0x1   :  { %9 = vsyncpa [#allocation3 + $0x1], 0 }
   0x2   :  { %10 = vsyncpa [#allocation6], 0 }
   0x3   :  { %11 = vsyncpa [#allocation4], 0 }
   0x4   :  { %13 = vsyncpa [#allocation4 + $0x1], 0  ;;  %s649_s9 = smov 0   ;;  %s651_s10 = smov 0  }
   0x5   :  { %s653_s11 = smov 0   ;;  %s655_s12 = smov 0  }
   0x6 LB: > { %s670_s13 = sadd.s32 4294967295, %s625_s12   ;;  %s371_s14 = sadd.s32 4294967294, %s625_s12   ;;  %s625_s12 = sphi %s655_s12, %s861_s12   ;;  %s621_s11 = sphi %s653_s11, %s860_s11   ;;  %s617_s10 = sphi %s651_s10, %s859_s10   ;;  %s613_s9 = sphi %s649_s9, %s858_s9  }
   0x7   : > { %p39_p0 = scmp.ne.s32.totalorder %s617_s10, %s613_s9  ;;  %p841_p1 = scmp.eq.s32.totalorder %s670_s13, 0 }
   0x8   : > { %p90_p3 = scmp.eq.s32.totalorder %s371_s14, 7  ;;  %p372_p5 = scmp.ge.s32.totalorder %s625_s12, 1 }
   0x9   : > { %p679_p4 = por %p841_p1, %p39_p0  ;;  %p97_p7 = scmp.lt.s32.totalorder %s625_s12, 9 }
   0xa   : > { %p684_p6 = por %p90_p3, %p39_p0  ;;  %s627_s18 = smov [#allocation5]  }
   0xb   : > { %s845_s15 = scalar_select %p679_p4, 1, 0 }
   0xc   : > { %s846_s16 = scalar_select %p684_p6, 1, 0 }
   0xd   : > { %p689_p8 = pnand %p372_p5, %p97_p7  ;;  %s109_s19 = sshll.u32 %s627_s18, 4  ;;  %s110_s19 = int_to_ptr.vmem [resolvable:$true] %s109_s19 }
   0xe   : > { %s702_s21 = sadd.s32 1, %s625_s12   ;;  %s26_s22 = sadd.s32 1, %s621_s11 }
   0xf   : > { %s847_s17 = scalar_select %p689_p8, 1, 0 }
  0x10   : > { %p450_p9 = pneg %p689_p8  ;;  %s23_s23 = ssub.s32 %s625_s12, %s702_s21 }
  0x11   : > { %s514_s24 = scalar_lea.vmem %s110_s19, 2048  ;;  %p522_p3 = scmp.lt.s32.totalorder %s110_s19, %s110_s19 }
  0x12   : > { %p697_p10 = pnand %p450_p9, %p841_p1  ;;  %p515_p12 = scmp.ne.s32.totalorder %s110_s19, %s514_s24 }
  0x13   : > { %p523_p5 = scmp.lt.s32.totalorder %s514_s24, %s514_s24 }
  0x14   : > { %p505_p11 = pneg %p697_p10 }
  0x15   : > { %p524_p7 = por %p523_p5, %p522_p3 }
  0x16   : > { %p517_p13 = pnand %p515_p12, %p505_p11 }
  0x18   : > { %p518_p0 = pneg %p517_p13 }
  0x1a   : > { %p525_p2 = pnand %p524_p7, %p518_p0 }
  0x1c   : > { %528 = shalt.err (!%p525_p2)
}
  0x1d   : > { %s628_s25 = smov 128   ;;  %s629_s26 = smov 8  }
  0x1e   : > { %453 = dma.hbm_to_vmem [thread:$0]  (!%p697_p10), %s839_s1, 2048, %s110_s19, [#allocation6], %s628_s25, %s628_s25, %s629_s26  }
  0x1f   : > { %p24_p2 = scmp.eq.s32.totalorder %s23_s23, 0  ;;  %p33_p9 = scmp.ne.s32.totalorder %s621_s11, %s617_s10 }
  0x20   : > { %p34_p11 = scmp.eq.s32.totalorder %s625_s12, 0  ;;  %p463_p12 = scmp.lt.s32.totalorder %s625_s12, 8 }
  0x21   : > { %s722_s29 = scalar_select %p24_p2, %s621_s11, %s26_s22  }
  0x22   : > { %p35_p13 = por %p34_p11, %p33_p9  ;;  %p849_p0 = scmp.eq.s32.totalorder %s670_s13, 7 }
  0x23   : > { %s123_s3 = sand.u32 1, %s621_s11   ;;  %s387_s4 = sshll.u32 %s625_s12, 8 }
  0x24   : > { %p726_p3 = por %p849_p0, %p33_p9  ;;  %s375_s5 = sshll.u32 %s123_s3, 4 }
  0x25   : > { %s735_s8 = scalar_lea.hbm %s838_s0, %s387_s4  ;;  %s127_s14 = scalar_lea.vmem [#allocation2], %s375_s5 }
  0x26   : > { %s850_s30 = scalar_select %p726_p3, 1, 0 }
  0x27   : > { %s134_s18 = sshll.u32 %s127_s14, 4  ;;  %p737_p10 = pnand %p463_p12, %p35_p13  ;;  %s741_s18 = int_to_ptr.vmem [resolvable:$true] %s134_s18 }
  0x28   : > { %s743_s20 = scalar_lea.sflag [#allocation3], %s123_s3  ;;  %s529_s22 = scalar_lea.hbm %s735_s8, 256 }
  0x29   : > { %p530_p5 = scmp.ne.s32.totalorder %s735_s8, %s529_s22  ;;  %p531_p7 = pneg %p737_p10 }
  0x2a   : > { %s534_s27 = scalar_lea.hbm %s838_s0, 2048  ;;  %p535_p11 = scmp.lt.s32.totalorder %s735_s8, %s838_s0 }
  0x2b   : > { %p532_p2 = pnand %p531_p7, %p530_p5  ;;  %p536_p12 = scmp.lt.s32.totalorder %s534_s27, %s529_s22 }
  0x2d   : > { %p533_p9 = pneg %p532_p2  ;;  %p537_p13 = por %p536_p12, %p535_p11 }
  0x2f   : > { %p538_p0 = pnand %p537_p13, %p533_p9 }
  0x31   : > { %541 = shalt.err (!%p538_p0)
}
  0x32   : > { %s542_s3 = scalar_lea.vmem %s741_s18, 256  ;;  %s630_s5 = smov [#allocation2]  }
  0x33   : > { %p543_p1 = scmp.ne.s32.totalorder %s741_s18, %s542_s3  ;;  %s547_s6 = sshll.u32 %s630_s5, 4  ;;  %s548_s6 = int_to_ptr.vmem [resolvable:$false] %s547_s6 }
  0x34   : > { %s549_s7 = scalar_lea.vmem %s548_s6, 512  ;;  %p550_p2 = scmp.lt.s32.totalorder %s741_s18, %s548_s6 }
  0x35   : > { %p545_p6 = pnand %p543_p1, %p531_p7  ;;  %p551_p3 = scmp.lt.s32.totalorder %s549_s7, %s542_s3 }
  0x37   : > { %p546_p5 = pneg %p545_p6  ;;  %p552_p4 = por %p551_p3, %p550_p2 }
  0x39   : > { %p553_p8 = pnand %p552_p4, %p546_p5 }
  0x3b   : > { %556 = shalt.err (!%p553_p8)
}
  0x3c   : > { %457 = dma.hbm_to_vmem [thread:$0]  (!%p737_p10), %s735_s8, 256, %s741_s18, %s743_s20, %s628_s25, %s628_s25, %s629_s26  }
  0x3d   : > { %p852_p1 = scmp.ne.s32.totalorder %s847_s17, 0 }
  0x3e   : > { %s770_s14 = sand.u32 (!%p852_p1), 1, %s617_s10   ;;  %p853_p4 = scmp.ne.s32.totalorder (!%p852_p1), %s845_s15, 0 }
  0x3f   : > { %146 = sbr.rel (%p852_p1) target bundleno = 314 (0x13a), region = 28  ;;  %s379_s22 = sshll.u32 (!%p852_p1), %s770_s14, 4 }
  0x40   : > { %s149_s23 = scalar_lea.sflag (!%p852_p1), [#allocation3], %s770_s14  ;;  %s776_s19 = scalar_lea.vmem (!%p852_p1), [#allocation2], %s379_s22 }
  0x44   : > { %600 = dma.done.wait (%p853_p4), %s149_s23, 256  }
  0x45   : > { %602 = vsyncadd (%p853_p4), %s149_s23, 4294967040  ;;  %p854_p6 = scmp.eq.s32.totalorder %s670_s13, 0 }
  0x47   : > { %604 = dma.done.wait (%p854_p6), [#allocation6], 2048   ;;  %p855_p8 = pmov %p854_p6 }
  0x48   : > { %v196_v0 = vld [vmem:[#allocation5 + $0x78] sm:$0xff]  ;;  %v195_v1 = vld [vmem:[#allocation5 + $0x70] sm:$0xff]  ;;  %v194_v2 = vld [vmem:[#allocation5 + $0x68] sm:$0xff]  ;;  %s176_s15 = scalar_lea.vmem [#allocation7], %s379_s22  ;;  %s388_s25 = sshll.u32 %s670_s13, 8 }
  0x49   : > { %606 = vsyncadd (%p855_p8), [#allocation6], 4294965248  ;;  %407 = vmatprep.subr.mxu0 %v196_v0  ;;  %v193_v3 = vld [vmem:[#allocation5 + $0x60] sm:$0xff]  ;;  %v192_v5 = vld [vmem:[#allocation5 + $0x58] sm:$0xff]  ;;  %s288_s17 = sshll.u32 %s176_s15, 4  ;;  %s796_s18 = scalar_lea.hbm %s840_s2, %s388_s25  ;;  %s791_s17 = int_to_ptr.vmem [resolvable:$true] %s288_s17 }
  0x4a   : > { %408 = vmatpush3.msra.mxu0 %v196_v0  ;;  %v179_v4 = vld [vmem:[%s776_s19] sm:$0xff]  ;;  %v190_v7 = vld [vmem:[#allocation5 + $0x48] sm:$0xff]  ;;  %v188_v9 = vld [vmem:[#allocation5 + $0x38] sm:$0xff]  ;;  %s275_s20 = scalar_lea.sflag [#allocation4], %s770_s14  ;;  %s557_s24 = scalar_lea.vmem %s791_s17, 256 }
  0x4b   : > { %409 = vmatprep.subr.mxu0 %v195_v1  ;;  %439 = vmatprep.mubr.f32.mxu0 %v179_v4  ;;  %v191_v6 = vld [vmem:[#allocation5 + $0x50] sm:$0xff]  ;;  %v189_v8 = vld [vmem:[#allocation5 + $0x40] sm:$0xff]  ;;  %v186_v11 = vld [vmem:[#allocation5 + $0x28] sm:$0xff]  ;;  %p558_p3 = scmp.ne.s32.totalorder %s791_s17, %s557_s24  ;;  %p856_p10 = scmp.ne.s32.totalorder %s850_s30, 0 }
  0x4c   : > { %410 = vmatpush3.msra.mxu0 %v195_v1  ;;  %v187_v10 = vld [vmem:[#allocation5 + $0x30] sm:$0xff]  ;;  %v185_v12 = vld [vmem:[#allocation5 + $0x20] sm:$0xff]  ;;  %v184_v13 = vld [vmem:[#allocation5 + $0x18] sm:$0xff]  ;;  %s631_s13 = smov [#allocation7]  }
  0x4d   : > { %411 = vmatprep.subr.mxu0 %v194_v2  ;;  %v183_v14 = vld [vmem:[#allocation5 + $0x10] sm:$0xff]  ;;  %v182_v15 = vld [vmem:[#allocation5 + $0x8] sm:$0xff]  ;;  %v181_v16 = vld [vmem:[#allocation5] sm:$0xff]  ;;  %p559_p7 = pnand %p558_p3, %p856_p10  ;;  %s561_s27 = sshll.u32 %s631_s13, 4  ;;  %s562_s27 = int_to_ptr.vmem [resolvable:$false] %s561_s27 }
  0x4e   : > { %412 = vmatpush3.msra.mxu0 %v194_v2  ;;  %v180_v17 = vld [vmem:[%s776_s19 + $0x8] sm:$0xff]  ;;  %s563_s28 = scalar_lea.vmem %s562_s27, 512  ;;  %p564_p11 = scmp.lt.s32.totalorder %s791_s17, %s562_s27 }
  0x4f   : > { %413 = vmatprep.subr.mxu0 %v193_v3  ;;  %p560_p9 = pneg %p559_p7  ;;  %p565_p12 = scmp.lt.s32.totalorder %s563_s28, %s557_s24 }
  0x50   : > { %414 = vmatpush3.msra.mxu0 %v193_v3 }
  0x51   : > { %415 = vmatprep.subr.mxu0 %v192_v5  ;;  %p566_p13 = por %p565_p12, %p564_p11 }
  0x52   : > { %416 = vmatpush3.msra.mxu0 %v192_v5 }
  0x53   : > { %417 = vmatprep.subr.mxu0 %v191_v6  ;;  %p567_p0 = pnand %p566_p13, %p560_p9 }
  0x54   : > { %418 = vmatpush3.msra.mxu0 %v191_v6 }
  0x55   : > { %419 = vmatprep.subr.mxu0 %v190_v7 }
  0x56   : > { %420 = vmatpush3.msra.mxu0 %v190_v7 }
  0x57   : > { %421 = vmatprep.subr.mxu0 %v189_v8 }
  0x58   : > { %422 = vmatpush3.msra.mxu0 %v189_v8 }
  0x59   : > { %423 = vmatprep.subr.mxu0 %v188_v9 }
  0x5a   : > { %424 = vmatpush3.msra.mxu0 %v188_v9 }
  0x5b   : > { %425 = vmatprep.subr.mxu0 %v187_v10 }
  0x5c   : > { %426 = vmatpush3.msra.mxu0 %v187_v10 }
  0x5d   : > { %427 = vmatprep.subr.mxu0 %v186_v11 }
  0x5e   : > { %428 = vmatpush3.msra.mxu0 %v186_v11 }
  0x5f   : > { %429 = vmatprep.subr.mxu0 %v185_v12 }
  0x60   : > { %430 = vmatpush3.msra.mxu0 %v185_v12 }
  0x61   : > { %431 = vmatprep.subr.mxu0 %v184_v13 }
  0x62   : > { %432 = vmatpush3.msra.mxu0 %v184_v13 }
  0x63   : > { %433 = vmatprep.subr.mxu0 %v183_v14 }
  0x64   : > { %434 = vmatpush3.msra.mxu0 %v183_v14 }
  0x65   : > { %435 = vmatprep.subr.mxu0 %v182_v15 }
  0x66   : > { %436 = vmatpush3.msra.mxu0 %v182_v15 }
  0x67   : > { %437 = vmatprep.subr.mxu0 %v181_v16 }
  0x68   : > { %438 = vmatpush3.msra.mxu0 %v181_v16 }
  0x69   : > { %440 = vmatmul.mubr.f32.vlgmr.msra.gmra.mxu0 %v180_v17 }
 0x129   : > { %v441_v18 = vpop.f32.mrf.mxu0 }
 0x12a   : > { %273 = vst [vmem:[%s176_s15 + $0x8] sm:$0xff] %v441_v18 }
 0x12b   : > { %v263_v19 = vpop.f32.mrf.mxu0 }
 0x12c   : > { %272 = vst [vmem:[%s176_s15] sm:$0xff] %v263_v19 }
 0x12d   : > { %570 = shalt.err (!%p567_p0)
}
 0x12e   : > { %s571_s4 = scalar_lea.hbm %s796_s18, 256  ;;  %s575_s6 = scalar_lea.hbm %s840_s2, 2048 }
 0x12f   : > { %p572_p5 = scmp.ne.s32.totalorder %s796_s18, %s571_s4  ;;  %p576_p4 = scmp.lt.s32.totalorder %s796_s18, %s840_s2 }
 0x130   : > { %p577_p6 = scmp.lt.s32.totalorder %s575_s6, %s571_s4 }
 0x131   : > { %p573_p2 = pnand %p572_p5, %p856_p10 }
 0x132   : > { %p578_p8 = por %p577_p6, %p576_p4 }
 0x133   : > { %p574_p1 = pneg %p573_p2 }
 0x135   : > { %p579_p3 = pnand %p578_p8, %p574_p1 }
 0x137   : > { %582 = shalt.err (!%p579_p3)
}
 0x138   : > { %s632_s23 = smov 128   ;;  %s633_s19 = smov 8  }
 0x139   : > { %448 = dma.vmem_to_hbm [thread:$0]  (%p856_p10), %s791_s17, 256, %s796_s18, %s275_s20, %s632_s23, %s632_s23, %s633_s19  }
 0x13a PF: > { %p465_p7 = scmp.ge.s32.totalorder %s625_s12, 2  ;;  %s303_s15 = sand.u32 1, %s613_s9  }
 0x13b   : > { %p857_p9 = scmp.ne.s32.totalorder %s846_s16, 0  ;;  %s304_s25 = scalar_lea.sflag [#allocation4], %s303_s15 }
 0x13d   : > { %p459_p11 = pnand %p465_p7, %p857_p9 }
 0x13f   : > { %p460_p12 = pneg %p459_p11 }
 0x141   : > { %608 = dma.done.wait (%p460_p12), %s304_s25, 256  }
 0x142   : > { %610 = vsyncadd (%p460_p12), %s304_s25, 4294967040  ;;  %p16_p13 = scmp.ge.s32.totalorder %s702_s21, 10   ;;  %s858_s9 = smov %s617_s10 }
 0x143   : > { %s859_s10 = smov %s621_s11  ;;  %s860_s11 = smov %s722_s29 }
 0x144   : > { %s861_s12 = smov %s702_s21  ;;  %18 = sbr.rel (!%p16_p13) target bundleno = 6 (0x6), region = 77 }
 0x149   :  { %309 = vsyncpa [#allocation3], 1 }
 0x14a   :  { %311 = vsyncpa [#allocation3 + $0x1], 1 }
 0x14b   :  { %312 = vsyncpa [#allocation6], 1 }
 0x14c   :  { %313 = vsyncpa [#allocation4], 1 }
 0x14d   :  { %315 = vsyncpa [#allocation4 + $0x1], 1 }

</bundles_post_ra>
